<compile_context>
chip_gen: v5e
topology: v5e:2x2
jax: 0.10.0
libtpu: 0.0.40
codegen_flags: <defaults>
</compile_context>

<pallas_src>
import functools

import jax
import jax.numpy as jnp
from jax import lax
from jax.experimental import pallas as pl
from jax.experimental.pallas import tpu as pltpu


def _cross_attn_kernel(x_ref, k_ref, v_ref, wq_ref, wp_ref, bp_ref, o_ref,
                       *scratch, num_heads, head_dim, dense_out):
    x = x_ref[0]        # (TN, C)   bf16
    k_all = k_ref[0]    # (Nk, D)   bf16  (already projected in the wrapper)
    v_all = v_ref[0]    # (Nv, D)   bf16  (already projected in the wrapper)
    wp = wp_ref[...]    # (D, out)  bf16
    bias = bp_ref[...]  # (1, out)  f32

    # Q projection for ALL heads at once (softmax scale folded into wq).
    q_all = jnp.dot(x, wq_ref[...],
                    preferred_element_type=jnp.float32).astype(jnp.bfloat16)

    if dense_out:
        heads_ref = scratch[0]            # (TN, D) bf16 scratch, lane-aligned heads
    else:
        acc = jnp.zeros((x.shape[0], wp.shape[1]), jnp.float32)

    # Per-head attention; static unroll, static slices.
    for h in range(num_heads):
        lo = h * head_dim
        qh = lax.slice_in_dim(q_all, lo, lo + head_dim, axis=1)   # (TN, d)
        kh = lax.slice_in_dim(k_all, lo, lo + head_dim, axis=1)   # (Nk, d)
        vh = lax.slice_in_dim(v_all, lo, lo + head_dim, axis=1)   # (Nv, d)

        # scores: contract head_dim of q with head_dim of k (no explicit .T).
        s = lax.dot_general(qh, kh, (((1,), (1,)), ((), ())),
                            preferred_element_type=jnp.float32)   # (TN, Nk)
        s = s - jnp.max(s, axis=-1, keepdims=True)
        p = jnp.exp(s)
        p = p * pl.reciprocal(jnp.sum(p, axis=-1, keepdims=True), approx=True)
        # attn_drop is identity at inference (p = 0.0).

        oh = jnp.dot(p.astype(jnp.bfloat16), vh,
                     preferred_element_type=jnp.float32)          # (TN, d) fp32

        if dense_out:
            # head_dim % 128 == 0 -> lane-aligned, unmasked stores.
            heads_ref[:, lo:lo + head_dim] = oh.astype(jnp.bfloat16)
        else:
            # Sublane slice of Wp is cheap; avoids masked lane stores entirely.
            wp_h = lax.slice_in_dim(wp, lo, lo + head_dim, axis=0)  # (d, out)
            acc = acc + jnp.dot(oh.astype(jnp.bfloat16), wp_h,
                                preferred_element_type=jnp.float32)

    if dense_out:
        out = jnp.dot(heads_ref[...], wp,
                      preferred_element_type=jnp.float32) + bias
    else:
        out = acc + bias
    o_ref[0] = out.astype(o_ref.dtype)
    # proj_drop is identity at inference (p = 0.0).


def _pick_q_tile(n, target=256):
    """Largest multiple-of-8 divisor of n that is <= target; else the full n."""
    if n <= target:
        return n
    for t in range(target - target % 8, 7, -8):
        if n % t == 0:
            return t
    return n  # no clean multiple-of-8 divisor: single full-N tile (always legal)


def cross_attention(x, k_in, v_in, wq, wk, wv, wp, bp, *, num_heads,
                    q_tile_target=256, out_dtype=None,
                    vmem_limit_bytes=56 * 1024 * 1024):
    B, N, C = x.shape
    Nk = k_in.shape[1]
    Nv = v_in.shape[1]
    all_head_dim = wq.shape[0]
    head_dim = all_head_dim // num_heads
    assert head_dim * num_heads == all_head_dim
    out_dim = wp.shape[0]
    scale = head_dim ** (-0.5)
    out_dtype = x.dtype if out_dtype is None else out_dtype

    tile_n = _pick_q_tile(N, q_tile_target)
    n_q_tiles = N // tile_n

    # bf16 operands for the MXU; fp32 accumulation inside the kernel.
    xb = x.astype(jnp.bfloat16)
    # Pre-transposed weights (in, out); softmax scale folded into Wq.
    wq_t = (wq.T * scale).astype(jnp.bfloat16)      # (C, D)
    wk_t = wk.T.astype(jnp.bfloat16)                # (C, D)
    wv_t = wv.T.astype(jnp.bfloat16)                # (C, D)
    wp_t = wp.T.astype(jnp.bfloat16)                # (D, out)
    bp2 = bp.reshape(1, out_dim).astype(jnp.float32)

    # K/V projections hoisted out of the kernel: one XLA GEMM per batch rather
    # than a recompute for every q tile inside the kernel.
    kb = jnp.dot(k_in.astype(jnp.bfloat16), wk_t,
                 preferred_element_type=jnp.float32).astype(jnp.bfloat16)  # (B, Nk, D)
    vb = jnp.dot(v_in.astype(jnp.bfloat16), wv_t,
                 preferred_element_type=jnp.float32).astype(jnp.bfloat16)  # (B, Nv, D)

    dense_out = (head_dim % 128 == 0)
    scratch_shapes = ([pltpu.VMEM((tile_n, all_head_dim), jnp.bfloat16)]
                      if dense_out else [])

    kernel = functools.partial(_cross_attn_kernel, num_heads=num_heads,
                               head_dim=head_dim, dense_out=dense_out)

    single = pl.Buffered(1)  # grid-invariant blocks: no double buffer needed

    return pl.pallas_call(
        kernel,
        out_shape=jax.ShapeDtypeStruct((B, N, out_dim), out_dtype),
        grid_spec=pltpu.PrefetchScalarGridSpec(
            num_scalar_prefetch=0,
            grid=(B, n_q_tiles),
            in_specs=[
                pl.BlockSpec((1, tile_n, C), lambda b, qi: (b, qi, 0)),
                pl.BlockSpec((1, Nk, all_head_dim), lambda b, qi: (b, 0, 0)),
                pl.BlockSpec((1, Nv, all_head_dim), lambda b, qi: (b, 0, 0)),
                pl.BlockSpec((C, all_head_dim), lambda b, qi: (0, 0),
                             pipeline_mode=single),
                pl.BlockSpec((all_head_dim, out_dim), lambda b, qi: (0, 0),
                             pipeline_mode=single),
                pl.BlockSpec((1, out_dim), lambda b, qi: (0, 0),
                             pipeline_mode=single),
            ],
            out_specs=pl.BlockSpec((1, tile_n, out_dim),
                                   lambda b, qi: (b, qi, 0)),
            scratch_shapes=scratch_shapes,
        ),
        compiler_params=pltpu.CompilerParams(
            dimension_semantics=("parallel", "parallel"),
            vmem_limit_bytes=vmem_limit_bytes),
    )(xb, kb, vb, wq_t, wp_t, bp2)


def cross_attention_ref(x, k_in, v_in, wq, wk, wv, wp, bp, *, num_heads):
    """Pure-JAX reference mirroring the PyTorch forward (fp32)."""
    B, N, C = x.shape
    Nk, Nv = k_in.shape[1], v_in.shape[1]
    D = wq.shape[0]
    d = D // num_heads
    scale = d ** (-0.5)
    q = (x @ wq.T).reshape(B, N, num_heads, d).transpose(0, 2, 1, 3)
    k = (k_in @ wk.T).reshape(B, Nk, num_heads, d).transpose(0, 2, 1, 3)
    v = (v_in @ wv.T).reshape(B, Nv, num_heads, d).transpose(0, 2, 1, 3)
    attn = jax.nn.softmax((q * scale) @ jnp.swapaxes(k, -2, -1), axis=-1)
    out = (attn @ v).transpose(0, 2, 1, 3).reshape(B, N, D)
    return out @ wp.T + bp


def _run_case(key, B, N, Nk, Nv, C, num_heads):
    out_dim = C  # module default: out_dim = dim
    keys = jax.random.split(key, 8)
    x = jax.random.normal(keys[0], (B, N, C), dtype=jnp.float32)
    k_in = jax.random.normal(keys[1], (B, Nk, C), dtype=jnp.float32)
    v_in = jax.random.normal(keys[2], (B, Nv, C), dtype=jnp.float32)
    # qkv_bias=False (module default): no q/k/v biases; proj has weight + bias.
    wq = jax.random.normal(keys[3], (C, C), dtype=jnp.float32) * 0.05
    wk = jax.random.normal(keys[4], (C, C), dtype=jnp.float32) * 0.05
    wv = jax.random.normal(keys[5], (C, C), dtype=jnp.float32) * 0.05
    wp = jax.random.normal(keys[6], (out_dim, C), dtype=jnp.float32) * 0.05
    bp = jax.random.normal(keys[7], (out_dim,), dtype=jnp.float32) * 0.05

    out = cross_attention(x, k_in, v_in, wq, wk, wv, wp, bp,
                          num_heads=num_heads)
    out = jax.block_until_ready(out)
    ref = cross_attention_ref(x, k_in, v_in, wq, wk, wv, wp, bp,
                              num_heads=num_heads)
    assert out.shape == (B, N, out_dim)
    # bf16 operands in the kernel vs fp32 reference -> loosened tolerance.
    assert jnp.allclose(out, ref, atol=2e-2, rtol=2e-2), "mismatch vs reference"


if __name__ == "__main__":
    key = jax.random.PRNGKey(0)
    k1, k2 = jax.random.split(key)
    # Case 1 (per-head-accumulate output path): dim=32, 4 heads (head_dim=8).
    _run_case(k1, B=2, N=8, Nk=16, Nv=16, C=32, num_heads=4)
    # Case 2 (dense lane-aligned output path): dim=256, 2 heads (head_dim=128).
    _run_case(k2, B=1, N=16, Nk=8, Nv=8, C=256, num_heads=2)
    print("KERNEL_OK")
</pallas_src>

<mosaic_0001>
module attributes {stable_mosaic.version = 11 : i64} {
  func.func @_cross_attn_kernel(%arg0: i32, %arg1: i32, %arg2: memref<1x8x32xbf16, #tpu.memory_space<vmem>>, %arg3: memref<1x16x32xbf16, #tpu.memory_space<vmem>>, %arg4: memref<1x16x32xbf16, #tpu.memory_space<vmem>>, %arg5: memref<32x32xbf16, #tpu.memory_space<vmem>>, %arg6: memref<32x32xbf16, #tpu.memory_space<vmem>>, %arg7: memref<1x32xf32, #tpu.memory_space<vmem>>, %arg8: memref<1x8x32xf32, #tpu.memory_space<vmem>>) attributes {dimension_semantics = [#tpu.dimension_semantics<parallel>, #tpu.dimension_semantics<parallel>], iteration_bounds = array<i64: 2, 1>, scalar_prefetch = 0 : i64, scratch_operands = 0 : i64, tpu.core_type = #tpu.core_type<tc>, window_params = [{transform_indices = @transform_0, window_bounds = array<i64: 1, 8, 32>}, {transform_indices = @transform_1, window_bounds = array<i64: 1, 16, 32>}, {transform_indices = @transform_2, window_bounds = array<i64: 1, 16, 32>}, {pipeline_mode = #tpu.pipeline_mode<synchronous>, transform_indices = @transform_3, window_bounds = array<i64: 32, 32>}, {pipeline_mode = #tpu.pipeline_mode<synchronous>, transform_indices = @transform_4, window_bounds = array<i64: 32, 32>}, {pipeline_mode = #tpu.pipeline_mode<synchronous>, transform_indices = @transform_5, window_bounds = array<i64: 1, 32>}, {transform_indices = @transform_6, window_bounds = array<i64: 1, 8, 32>}]} {
    %c0 = arith.constant 0 : index
    %c0_0 = arith.constant 0 : index
    %c0_1 = arith.constant 0 : index
    %0 = vector.load %arg2[%c0, %c0_0, %c0_1] : memref<1x8x32xbf16, #tpu.memory_space<vmem>>, vector<1x8x32xbf16>
    %1 = vector.shape_cast %0 : vector<1x8x32xbf16> to vector<8x32xbf16>
    %c0_2 = arith.constant 0 : index
    %c0_3 = arith.constant 0 : index
    %c0_4 = arith.constant 0 : index
    %2 = vector.load %arg3[%c0_2, %c0_3, %c0_4] : memref<1x16x32xbf16, #tpu.memory_space<vmem>>, vector<1x16x32xbf16>
    %3 = vector.shape_cast %2 : vector<1x16x32xbf16> to vector<16x32xbf16>
    %c0_5 = arith.constant 0 : index
    %c0_6 = arith.constant 0 : index
    %c0_7 = arith.constant 0 : index
    %4 = vector.load %arg4[%c0_5, %c0_6, %c0_7] : memref<1x16x32xbf16, #tpu.memory_space<vmem>>, vector<1x16x32xbf16>
    %5 = vector.shape_cast %4 : vector<1x16x32xbf16> to vector<16x32xbf16>
    %c0_8 = arith.constant 0 : index
    %c0_9 = arith.constant 0 : index
    %6 = vector.load %arg6[%c0_8, %c0_9] : memref<32x32xbf16, #tpu.memory_space<vmem>>, vector<32x32xbf16>
    %c0_10 = arith.constant 0 : index
    %c0_11 = arith.constant 0 : index
    %7 = vector.load %arg7[%c0_10, %c0_11] : memref<1x32xf32, #tpu.memory_space<vmem>>, vector<1x32xf32>
    %c0_12 = arith.constant 0 : index
    %c0_13 = arith.constant 0 : index
    %8 = vector.load %arg5[%c0_12, %c0_13] : memref<32x32xbf16, #tpu.memory_space<vmem>>, vector<32x32xbf16>
    %cst = arith.constant dense<0.000000e+00> : vector<8x32xf32>
    %9 = tpu.matmul %1, %8, %cst {dimension_numbers = #tpu.dot_dimension_numbers<[1], [0], [0], [1], [0, 0, 1, 1], [], []>} : vector<8x32xbf16>, vector<32x32xbf16>, vector<8x32xf32> -> vector<8x32xf32>
    %10 = arith.truncf %9 : vector<8x32xf32> to vector<8x32xbf16>
    %cst_14 = arith.constant 0.000000e+00 : f32
    %11 = vector.broadcast %cst_14 : f32 to vector<8x32xf32>
    %12 = vector.extract_strided_slice %10 {offsets = [0, 0], sizes = [8, 8], strides = [1, 1]} : vector<8x32xbf16> to vector<8x8xbf16>
    %13 = vector.extract_strided_slice %3 {offsets = [0, 0], sizes = [16, 8], strides = [1, 1]} : vector<16x32xbf16> to vector<16x8xbf16>
    %14 = vector.extract_strided_slice %5 {offsets = [0, 0], sizes = [16, 8], strides = [1, 1]} : vector<16x32xbf16> to vector<16x8xbf16>
    %cst_15 = arith.constant dense<0.000000e+00> : vector<8x16xf32>
    %15 = tpu.matmul %12, %13, %cst_15 {dimension_numbers = #tpu.dot_dimension_numbers<[1], [1], [0], [0], [0, 0, 1, 0], [], []>} : vector<8x8xbf16>, vector<16x8xbf16>, vector<8x16xf32> -> vector<8x16xf32>
    %cst_16 = arith.constant dense<0xFF800000> : vector<8xf32>
    %16 = vector.multi_reduction <maximumf>, %15, %cst_16 [1] : vector<8x16xf32> to vector<8xf32>
    %17 = vector.shape_cast %16 : vector<8xf32> to vector<8x1xf32>
    %18 = vector.broadcast %17 : vector<8x1xf32> to vector<8x16xf32>
    %19 = arith.subf %15, %18 : vector<8x16xf32>
    %20 = math.exp %19 : vector<8x16xf32>
    %cst_17 = arith.constant dense<0.000000e+00> : vector<8xf32>
    %21 = vector.multi_reduction <add>, %20, %cst_17 [1] : vector<8x16xf32> to vector<8xf32>
    %22 = vector.shape_cast %21 : vector<8xf32> to vector<8x1xf32>
    %23 = tpu.reciprocal %22 {approx = true} : vector<8x1xf32> -> vector<8x1xf32>
    %24 = vector.broadcast %23 : vector<8x1xf32> to vector<8x16xf32>
    %25 = arith.mulf %20, %24 : vector<8x16xf32>
    %26 = arith.truncf %25 : vector<8x16xf32> to vector<8x16xbf16>
    %cst_18 = arith.constant dense<0.000000e+00> : vector<8x8xf32>
    %27 = tpu.matmul %26, %14, %cst_18 {dimension_numbers = #tpu.dot_dimension_numbers<[1], [0], [0], [1], [0, 0, 1, 1], [], []>} : vector<8x16xbf16>, vector<16x8xbf16>, vector<8x8xf32> -> vector<8x8xf32>
    %28 = vector.extract_strided_slice %6 {offsets = [0, 0], sizes = [8, 32], strides = [1, 1]} : vector<32x32xbf16> to vector<8x32xbf16>
    %29 = arith.truncf %27 : vector<8x8xf32> to vector<8x8xbf16>
    %cst_19 = arith.constant dense<0.000000e+00> : vector<8x32xf32>
    %30 = tpu.matmul %29, %28, %cst_19 {dimension_numbers = #tpu.dot_dimension_numbers<[1], [0], [0], [1], [0, 0, 1, 1], [], []>} : vector<8x8xbf16>, vector<8x32xbf16>, vector<8x32xf32> -> vector<8x32xf32>
    %31 = arith.addf %11, %30 : vector<8x32xf32>
    %32 = vector.extract_strided_slice %10 {offsets = [0, 8], sizes = [8, 8], strides = [1, 1]} : vector<8x32xbf16> to vector<8x8xbf16>
    %33 = vector.extract_strided_slice %3 {offsets = [0, 8], sizes = [16, 8], strides = [1, 1]} : vector<16x32xbf16> to vector<16x8xbf16>
    %34 = vector.extract_strided_slice %5 {offsets = [0, 8], sizes = [16, 8], strides = [1, 1]} : vector<16x32xbf16> to vector<16x8xbf16>
    %cst_20 = arith.constant dense<0.000000e+00> : vector<8x16xf32>
    %35 = tpu.matmul %32, %33, %cst_20 {dimension_numbers = #tpu.dot_dimension_numbers<[1], [1], [0], [0], [0, 0, 1, 0], [], []>} : vector<8x8xbf16>, vector<16x8xbf16>, vector<8x16xf32> -> vector<8x16xf32>
    %cst_21 = arith.constant dense<0xFF800000> : vector<8xf32>
    %36 = vector.multi_reduction <maximumf>, %35, %cst_21 [1] : vector<8x16xf32> to vector<8xf32>
    %37 = vector.shape_cast %36 : vector<8xf32> to vector<8x1xf32>
    %38 = vector.broadcast %37 : vector<8x1xf32> to vector<8x16xf32>
    %39 = arith.subf %35, %38 : vector<8x16xf32>
    %40 = math.exp %39 : vector<8x16xf32>
    %cst_22 = arith.constant dense<0.000000e+00> : vector<8xf32>
    %41 = vector.multi_reduction <add>, %40, %cst_22 [1] : vector<8x16xf32> to vector<8xf32>
    %42 = vector.shape_cast %41 : vector<8xf32> to vector<8x1xf32>
    %43 = tpu.reciprocal %42 {approx = true} : vector<8x1xf32> -> vector<8x1xf32>
    %44 = vector.broadcast %43 : vector<8x1xf32> to vector<8x16xf32>
    %45 = arith.mulf %40, %44 : vector<8x16xf32>
    %46 = arith.truncf %45 : vector<8x16xf32> to vector<8x16xbf16>
    %cst_23 = arith.constant dense<0.000000e+00> : vector<8x8xf32>
    %47 = tpu.matmul %46, %34, %cst_23 {dimension_numbers = #tpu.dot_dimension_numbers<[1], [0], [0], [1], [0, 0, 1, 1], [], []>} : vector<8x16xbf16>, vector<16x8xbf16>, vector<8x8xf32> -> vector<8x8xf32>
    %48 = vector.extract_strided_slice %6 {offsets = [8, 0], sizes = [8, 32], strides = [1, 1]} : vector<32x32xbf16> to vector<8x32xbf16>
    %49 = arith.truncf %47 : vector<8x8xf32> to vector<8x8xbf16>
    %cst_24 = arith.constant dense<0.000000e+00> : vector<8x32xf32>
    %50 = tpu.matmul %49, %48, %cst_24 {dimension_numbers = #tpu.dot_dimension_numbers<[1], [0], [0], [1], [0, 0, 1, 1], [], []>} : vector<8x8xbf16>, vector<8x32xbf16>, vector<8x32xf32> -> vector<8x32xf32>
    %51 = arith.addf %31, %50 : vector<8x32xf32>
    %52 = vector.extract_strided_slice %10 {offsets = [0, 16], sizes = [8, 8], strides = [1, 1]} : vector<8x32xbf16> to vector<8x8xbf16>
    %53 = vector.extract_strided_slice %3 {offsets = [0, 16], sizes = [16, 8], strides = [1, 1]} : vector<16x32xbf16> to vector<16x8xbf16>
    %54 = vector.extract_strided_slice %5 {offsets = [0, 16], sizes = [16, 8], strides = [1, 1]} : vector<16x32xbf16> to vector<16x8xbf16>
    %cst_25 = arith.constant dense<0.000000e+00> : vector<8x16xf32>
    %55 = tpu.matmul %52, %53, %cst_25 {dimension_numbers = #tpu.dot_dimension_numbers<[1], [1], [0], [0], [0, 0, 1, 0], [], []>} : vector<8x8xbf16>, vector<16x8xbf16>, vector<8x16xf32> -> vector<8x16xf32>
    %cst_26 = arith.constant dense<0xFF800000> : vector<8xf32>
    %56 = vector.multi_reduction <maximumf>, %55, %cst_26 [1] : vector<8x16xf32> to vector<8xf32>
    %57 = vector.shape_cast %56 : vector<8xf32> to vector<8x1xf32>
    %58 = vector.broadcast %57 : vector<8x1xf32> to vector<8x16xf32>
    %59 = arith.subf %55, %58 : vector<8x16xf32>
    %60 = math.exp %59 : vector<8x16xf32>
    %cst_27 = arith.constant dense<0.000000e+00> : vector<8xf32>
    %61 = vector.multi_reduction <add>, %60, %cst_27 [1] : vector<8x16xf32> to vector<8xf32>
    %62 = vector.shape_cast %61 : vector<8xf32> to vector<8x1xf32>
    %63 = tpu.reciprocal %62 {approx = true} : vector<8x1xf32> -> vector<8x1xf32>
    %64 = vector.broadcast %63 : vector<8x1xf32> to vector<8x16xf32>
    %65 = arith.mulf %60, %64 : vector<8x16xf32>
    %66 = arith.truncf %65 : vector<8x16xf32> to vector<8x16xbf16>
    %cst_28 = arith.constant dense<0.000000e+00> : vector<8x8xf32>
    %67 = tpu.matmul %66, %54, %cst_28 {dimension_numbers = #tpu.dot_dimension_numbers<[1], [0], [0], [1], [0, 0, 1, 1], [], []>} : vector<8x16xbf16>, vector<16x8xbf16>, vector<8x8xf32> -> vector<8x8xf32>
    %68 = vector.extract_strided_slice %6 {offsets = [16, 0], sizes = [8, 32], strides = [1, 1]} : vector<32x32xbf16> to vector<8x32xbf16>
    %69 = arith.truncf %67 : vector<8x8xf32> to vector<8x8xbf16>
    %cst_29 = arith.constant dense<0.000000e+00> : vector<8x32xf32>
    %70 = tpu.matmul %69, %68, %cst_29 {dimension_numbers = #tpu.dot_dimension_numbers<[1], [0], [0], [1], [0, 0, 1, 1], [], []>} : vector<8x8xbf16>, vector<8x32xbf16>, vector<8x32xf32> -> vector<8x32xf32>
    %71 = arith.addf %51, %70 : vector<8x32xf32>
    %72 = vector.extract_strided_slice %10 {offsets = [0, 24], sizes = [8, 8], strides = [1, 1]} : vector<8x32xbf16> to vector<8x8xbf16>
    %73 = vector.extract_strided_slice %3 {offsets = [0, 24], sizes = [16, 8], strides = [1, 1]} : vector<16x32xbf16> to vector<16x8xbf16>
    %74 = vector.extract_strided_slice %5 {offsets = [0, 24], sizes = [16, 8], strides = [1, 1]} : vector<16x32xbf16> to vector<16x8xbf16>
    %cst_30 = arith.constant dense<0.000000e+00> : vector<8x16xf32>
    %75 = tpu.matmul %72, %73, %cst_30 {dimension_numbers = #tpu.dot_dimension_numbers<[1], [1], [0], [0], [0, 0, 1, 0], [], []>} : vector<8x8xbf16>, vector<16x8xbf16>, vector<8x16xf32> -> vector<8x16xf32>
    %cst_31 = arith.constant dense<0xFF800000> : vector<8xf32>
    %76 = vector.multi_reduction <maximumf>, %75, %cst_31 [1] : vector<8x16xf32> to vector<8xf32>
    %77 = vector.shape_cast %76 : vector<8xf32> to vector<8x1xf32>
    %78 = vector.broadcast %77 : vector<8x1xf32> to vector<8x16xf32>
    %79 = arith.subf %75, %78 : vector<8x16xf32>
    %80 = math.exp %79 : vector<8x16xf32>
    %cst_32 = arith.constant dense<0.000000e+00> : vector<8xf32>
    %81 = vector.multi_reduction <add>, %80, %cst_32 [1] : vector<8x16xf32> to vector<8xf32>
    %82 = vector.shape_cast %81 : vector<8xf32> to vector<8x1xf32>
    %83 = tpu.reciprocal %82 {approx = true} : vector<8x1xf32> -> vector<8x1xf32>
    %84 = vector.broadcast %83 : vector<8x1xf32> to vector<8x16xf32>
    %85 = arith.mulf %80, %84 : vector<8x16xf32>
    %86 = arith.truncf %85 : vector<8x16xf32> to vector<8x16xbf16>
    %cst_33 = arith.constant dense<0.000000e+00> : vector<8x8xf32>
    %87 = tpu.matmul %86, %74, %cst_33 {dimension_numbers = #tpu.dot_dimension_numbers<[1], [0], [0], [1], [0, 0, 1, 1], [], []>} : vector<8x16xbf16>, vector<16x8xbf16>, vector<8x8xf32> -> vector<8x8xf32>
    %88 = vector.extract_strided_slice %6 {offsets = [24, 0], sizes = [8, 32], strides = [1, 1]} : vector<32x32xbf16> to vector<8x32xbf16>
    %89 = arith.truncf %87 : vector<8x8xf32> to vector<8x8xbf16>
    %cst_34 = arith.constant dense<0.000000e+00> : vector<8x32xf32>
    %90 = tpu.matmul %89, %88, %cst_34 {dimension_numbers = #tpu.dot_dimension_numbers<[1], [0], [0], [1], [0, 0, 1, 1], [], []>} : vector<8x8xbf16>, vector<8x32xbf16>, vector<8x32xf32> -> vector<8x32xf32>
    %91 = arith.addf %71, %90 : vector<8x32xf32>
    %92 = vector.broadcast %7 : vector<1x32xf32> to vector<8x32xf32>
    %93 = arith.addf %91, %92 : vector<8x32xf32>
    %c0_35 = arith.constant 0 : index
    %c0_36 = arith.constant 0 : index
    %c0_37 = arith.constant 0 : index
    %94 = vector.load %arg8[%c0_35, %c0_36, %c0_37] : memref<1x8x32xf32, #tpu.memory_space<vmem>>, vector<1x8x32xf32>
    %95 = vector.shape_cast %94 : vector<1x8x32xf32> to vector<8x32xf32>
    %96 = vector.shape_cast %93 : vector<8x32xf32> to vector<1x8x32xf32>
    tpu.vector_store %arg8[%c0_35, %c0_36, %c0_37], %96 {strides = array<i32>} : memref<1x8x32xf32, #tpu.memory_space<vmem>>, vector<1x8x32xf32>,
    return
  }
  func.func @transform_0(%arg0: i32, %arg1: i32) -> (i32, i32, i32) {
    %c0_i32 = arith.constant 0 : i32
    %c0_i32_0 = arith.constant 0 : i32
    return %arg0, %arg1, %c0_i32 : i32, i32, i32
  }
  func.func @transform_1(%arg0: i32, %arg1: i32) -> (i32, i32, i32) {
    %c0_i32 = arith.constant 0 : i32
    %c0_i32_0 = arith.constant 0 : i32
    %c0_i32_1 = arith.constant 0 : i32
    return %arg0, %c0_i32, %c0_i32_0 : i32, i32, i32
  }
  func.func @transform_2(%arg0: i32, %arg1: i32) -> (i32, i32, i32) {
    %c0_i32 = arith.constant 0 : i32
    %c0_i32_0 = arith.constant 0 : i32
    %c0_i32_1 = arith.constant 0 : i32
    return %arg0, %c0_i32, %c0_i32_0 : i32, i32, i32
  }
  func.func @transform_3(%arg0: i32, %arg1: i32) -> (i32, i32) {
    %c0_i32 = arith.constant 0 : i32
    %c0_i32_0 = arith.constant 0 : i32
    %c0_i32_1 = arith.constant 0 : i32
    return %c0_i32, %c0_i32_0 : i32, i32
  }
  func.func @transform_4(%arg0: i32, %arg1: i32) -> (i32, i32) {
    %c0_i32 = arith.constant 0 : i32
    %c0_i32_0 = arith.constant 0 : i32
    %c0_i32_1 = arith.constant 0 : i32
    return %c0_i32, %c0_i32_0 : i32, i32
  }
  func.func @transform_5(%arg0: i32, %arg1: i32) -> (i32, i32) {
    %c0_i32 = arith.constant 0 : i32
    %c0_i32_0 = arith.constant 0 : i32
    %c0_i32_1 = arith.constant 0 : i32
    return %c0_i32, %c0_i32_0 : i32, i32
  }
  func.func @transform_6(%arg0: i32, %arg1: i32) -> (i32, i32, i32) {
    %c0_i32 = arith.constant 0 : i32
    %c0_i32_0 = arith.constant 0 : i32
    return %arg0, %arg1, %c0_i32 : i32, i32, i32
  }
}

</mosaic_0001>

<bundles_post_ra>
// kernel: tpu_custom_call.1
= control target key start
LH: loop header
LB: loop body
LE: loop exit
PB: predicated region body
PF: predicated region fallthrough
CT: control target
= control target key end

     0   :  { %s1622_s0 = inlined_call_operand.hbm [shape: bf16[2,8,32], index: 0, kind: input, shape index: {}]   ;;  %s1623_s1 = inlined_call_operand.hbm [shape: bf16[2,16,32], index: 1, kind: input, shape index: {}]   ;;  %s1624_s2 = inlined_call_operand.hbm [shape: bf16[2,16,32], index: 2, kind: input, shape index: {}]   ;;  %s1625_s3 = inlined_call_operand.hbm [shape: bf16[32,32], index: 3, kind: input, shape index: {}]   ;;  %s1626_s4 = inlined_call_operand.hbm [shape: bf16[32,32], index: 4, kind: input, shape index: {}]   ;;  %s1627_s5 = inlined_call_operand.vmem [shape: f32[1,32], index: 5, kind: input, shape index: {}]   ;;  %s1628_s6 = inlined_call_operand.hbm [shape: f32[2,8,32], index: 6, kind: output, shape index: {}]  }
   0x1   :  { %1641 = sst [smem:[#allocation23_spill]] %s1623_s1 }
   0x2   :  { %1642 = sst [smem:[#allocation24_spill]] %s1625_s3 }
   0x3   :  { %1643 = sst [smem:[#allocation25_spill]] %s1627_s5 }
   0x4   :  { %11 = vsyncpa [#allocation3], 0 }
   0x5   :  { %13 = vsyncpa [#allocation3 + $0x1], 0 }
   0x6   :  { %14 = vsyncpa [#allocation6], 0 }
   0x7   :  { %16 = vsyncpa [#allocation6 + $0x1], 0 }
   0x8   :  { %17 = vsyncpa [#allocation9], 0 }
   0x9   :  { %18 = vsyncpa [#allocation4], 0 }
   0xa   :  { %20 = vsyncpa [#allocation4 + $0x1], 0  ;;  %s1376_s21 = smov 0   ;;  %s1378_s22 = smov 0  }
   0xb   :  { %s1380_s23 = smov 0   ;;  %s1382_s24 = smov 0  }
   0xc   :  { %s1384_s25 = smov 0   ;;  %s1386_s26 = smov 0  }
   0xd LB: > { %1644 = sst [smem:[#allocation16_spill]] %s1312_s21  ;;  %s1407_s27 = sadd.s32 4294967295, %s1332_s26   ;;  %s1332_s26 = sphi %s1386_s26, %s26_s26   ;;  %s1328_s25 = sphi %s1384_s25, %s1673_s25   ;;  %s1324_s24 = sphi %s1382_s24, %s1672_s24   ;;  %s1320_s23 = sphi %s1380_s23, %s1668_s23   ;;  %s1316_s22 = sphi %s1378_s22, %s1671_s22   ;;  %s1312_s21 = sphi %s1376_s21, %s1670_s21  }
   0xe   : > { %1645 = sst [smem:[#allocation17_spill]] %s1320_s23  ;;  %s918_s28 = sadd.s32 4294967294, %s1332_s26  }
   0xf   : > { %1646 = sst [smem:[#allocation18_spill]] %s1332_s26  ;;  %p60_p0 = scmp.ne.s32.totalorder %s1316_s22, %s1312_s21 }
  0x10   : > { %p61_p1 = scmp.eq.s32.totalorder %s1407_s27, 0  ;;  %p201_p2 = scmp.eq.s32.totalorder %s1407_s27, 1 }
  0x11   : > { %p207_p3 = scmp.eq.s32.totalorder %s918_s28, 1  ;;  %p919_p5 = scmp.ge.s32.totalorder %s1332_s26, 1 }
  0x12   : > { %p1416_p4 = por %p61_p1, %p60_p0  ;;  %p214_p7 = scmp.lt.s32.totalorder %s1332_s26, 3 }
  0x13   : > { %p1421_p6 = por %p207_p3, %p60_p0  ;;  %s1650_s3 = sld [smem:[#allocation24_spill]] }
  0x14   : > { %p1429_p8 = pnand %p919_p5, %p214_p7  ;;  %s1334_s11 = smov [#allocation8]  }
  0x15   : > { %s1648_s30 = scalar_select %p1421_p6, 1, 0 }
  0x16   : > { %p993_p9 = pneg %p1429_p8  ;;  %s227_s12 = sshll.u32 %s1334_s11, 4  ;;  %s228_s12 = int_to_ptr.vmem [resolvable:$true] %s227_s12 }
  0x17   : > { %1649 = sst [smem:[#allocation19_spill]] %s1648_s30  ;;  %s1629_s14 = smov 64  }
  0x18   : > { %p1437_p10 = pnand %p993_p9, %p61_p1  ;;  %s1631_s15 = smov 4  }
  0x19   : > { %s225_s9 = sshll.u32 %s1650_s3, 4  ;;  %s38_s16 = sadd.s32 1, %s1328_s25  ;;  %s226_s9 = int_to_ptr.hbm [resolvable:$true] %s225_s9 }
  0x1a   : > { %996 = dma.hbm_to_vmem [thread:$0]  (!%p1437_p10), %s226_s9, 256, %s228_s12, [#allocation9], %s1629_s14, %s1629_s14, %s1631_s15  }
  0x1b   : > { %p40_p12 = scmp.ge.s32.totalorder %s38_s16, 2  ;;  %s47_s17 = sadd.s32 1, %s1320_s23 }
  0x1c   : > { %p54_p13 = scmp.ne.s32.totalorder %s1320_s23, %s1316_s22  ;;  %p55_p0 = scmp.eq.s32.totalorder %s1332_s26, 0 }
  0x1d   : > { %s1675_s16 = smov (%p40_p12, %s38_s16), 0  ;;  %p1016_p7 = scmp.lt.s32.totalorder %s1332_s26, 2 }
  0x1e   : > { %1653 = sst [smem:[#allocation20_spill]] %s1675_s16  ;;  %p56_p3 = por %p55_p0, %p54_p13 }
  0x1f   : > { %p1456_p5 = por %p201_p2, %p54_p13  ;;  %s42_s19 = ssub.s32 %s1328_s25, %s1675_s16 }
  0x20   : > { %p45_p9 = scmp.eq.s32.totalorder %s42_s19, 0  ;;  %s1464_s20 = sand.u32 1, %s1320_s23  }
  0x21   : > { %s1654_s18 = scalar_select %p1456_p5, 1, 0 }
  0x22   : > { %p1466_p11 = pnand %p1016_p7, %p56_p3  ;;  %s278_s7 = sand.u32 1, %s1332_s26  }
  0x23   : > { %1655 = sst [smem:[#allocation21_spill]] %s1654_s18  ;;  %s925_s9 = sshll.u32 %s1464_s20, 3 }
  0x24   : > { %s1472_s8 = scalar_select %p45_p9, %s1320_s23, %s47_s17  }
  0x25   : > { %s971_s11 = sshll.u32 %s1328_s25, 3  ;;  %s1658_s1 = sld [smem:[#allocation23_spill]] }
  0x26   : > { %1657 = sst [smem:[#allocation22_spill]] %s1472_s8  ;;  %s282_s16 = scalar_lea.vmem [#allocation5], %s925_s9 }
  0x27   : > { %s290_s19 = sshll.u32 %s282_s16, 4  ;;  %s279_s30 = scalar_lea.sflag [#allocation6], %s278_s7  ;;  %s291_s19 = int_to_ptr.vmem [resolvable:$true] %s290_s19 }
  0x28   : > { %s1659_s21 = smov 4   ;;  %s1660_s26 = smov 64  }
  0x29   : > { %s309_s23 = scalar_lea.hbm %s1624_s2, %s971_s11  ;;  %s304_s12 = scalar_lea.vmem [#allocation7], %s925_s9 }
  0x2a   : > { %s310_s14 = sshll.u32 %s309_s23, 4  ;;  %s239_s7 = sshll.u32 %s1626_s4, 4  ;;  %s311_s14 = int_to_ptr.hbm [resolvable:$true] %s310_s14  ;;  %s240_s7 = int_to_ptr.hbm [resolvable:$true] %s239_s7 }
  0x2b   : > { %s287_s15 = scalar_lea.hbm %s1658_s1, %s971_s11  ;;  %s1337_s18 = smov [#allocation10]  }
  0x2c   : > { %s288_s3 = sshll.u32 %s287_s15, 4  ;;  %s312_s15 = sshll.u32 %s304_s12, 4  ;;  %s289_s3 = int_to_ptr.hbm [resolvable:$true] %s288_s3  ;;  %s313_s15 = int_to_ptr.vmem [resolvable:$true] %s312_s15 }
  0x2d   : > { %1006 = dma.hbm_to_vmem [thread:$0]  (!%p1466_p11), %s289_s3, 128, %s291_s19, %s279_s30, %s1660_s26, %s1660_s26, %s1659_s21  }
  0x2e   : > { %s241_s5 = sshll.u32 %s1337_s18, 4  ;;  %s923_s3 = sshll.u32 %s1464_s20, 2  ;;  %s242_s5 = int_to_ptr.vmem [resolvable:$true] %s241_s5 }
  0x2f   : > { %999 = dma.hbm_to_vmem [thread:$0]  (!%p1437_p10), %s240_s7, 256, %s242_s5, [#allocation9], %s1660_s26, %s1660_s26, %s1659_s21  }
  0x30   : > { %s924_s23 = sshll.u32 %s1328_s25, 2  ;;  %s262_s1 = scalar_lea.vmem [#allocation2], %s923_s3 }
  0x31   : > { %s267_s11 = scalar_lea.hbm %s1622_s0, %s924_s23  ;;  %s271_s17 = sshll.u32 %s262_s1, 4  ;;  %s272_s17 = int_to_ptr.vmem [resolvable:$true] %s271_s17 }
  0x32   : > { %s269_s19 = sshll.u32 %s267_s11, 4  ;;  %s259_s12 = scalar_lea.sflag [#allocation3], %s1464_s20  ;;  %s270_s19 = int_to_ptr.hbm [resolvable:$true] %s269_s19 }
  0x33   : > { %1003 = dma.hbm_to_vmem [thread:$0]  (!%p1466_p11), %s270_s19, 64, %s272_s17, %s259_s12  }
  0x34   : > { %1009 = dma.hbm_to_vmem [thread:$0]  (!%p1466_p11), %s311_s14, 128, %s313_s15, %s279_s30, %s1660_s26, %s1660_s26, %s1659_s21  }
  0x35   : > { %324 = sbr.rel (%p1429_p8) target bundleno = 1400 (0x578), region = 44  ;;  %s1511_s5 = sand.u32 (!%p1429_p8), 1, %s1316_s22  }
  0x36   : > { %s932_s13 = sshll.u32 (!%p1429_p8), %s1511_s5, 2  ;;  %s327_s18 = scalar_lea.sflag (!%p1429_p8), [#allocation3], %s1511_s5 }
  0x37   : > { %s330_s16 = scalar_lea.vmem (!%p1429_p8), [#allocation2], %s932_s13 }
  0x3a   : > { %1295 = dma.done.wait (%p1416_p4), %s327_s18, 64  }
  0x3b   : > { %1297 = vsyncadd (%p1416_p4), %s327_s18, 4294967232  ;;  %s336_s21 = sand.u32 1, %s1407_s27   ;;  %s1521_s26 = sshll.u32 %s1511_s5, 3 }
  0x3c   : > { %s337_s30 = scalar_lea.sflag [#allocation6], %s336_s21  ;;  %s340_s10 = scalar_lea.vmem [#allocation5], %s1521_s26 }
  0x3d   : > { %1299 = dma.done.wait (%p1416_p4), %s337_s30, 256  }
  0x3e   : > { %1301 = vsyncadd (%p1416_p4), %s337_s30, 4294967040  ;;  %s350_s20 = scalar_lea.vmem [#allocation7], %s1521_s26 }
  0x3f   : > { %1303 = dma.done.wait (%p61_p1), [#allocation9], 512  }
  0x40   : > { %1305 = vsyncadd (%p61_p1), [#allocation9], 4294966784  ;;  %v976_v0 = vld [vmem:[#allocation8 + $0x8] sm:$0xff]  ;;  %vm450_vm0 = vcmask 64512   ;;  %v975_v2 = vld [vmem:[#allocation8] sm:$0xff]  ;;  %s1338_s28 = smov 120  }
  0x41   : > { %v973_v1 = vld [vmem:[%s340_s10] sm:$0xff]  ;;  %437 = vmatpush.bf16.msra.mxu0 %v976_v0  ;;  %v401_v4 = vld [vmem:[%s330_s16] sm:$0xf]  ;;  %vm427_vm1 = vcmask 261120   ;;  %s1339_s27 = smov 112   ;;  %s1340_s29 = smov 104  }
  0x42   : > { %v455_v3 = vsel %vm450_vm0, %v973_v1, 0  ;;  %511 = vrot.lane.b32.xlu1 %v973_v1, %s1338_s28  ;;  %605 = vrot.lane.b32.xlu2 %v973_v1, %s1339_s27  ;;  %vm470_vm2 = vcmask 130048   ;;  %v1549_v24 = vld [vmem:[%s350_s20] sm:$0xff]  ;;  %vm567_vm3 = vcmask 1043456   ;;  %s968_s14 = sshll.u32 %s1324_s24, 3  ;;  %s1661_s9 = sld [smem:[#allocation25_spill]] }
  0x43   : > { %464 = vmatpush.bf16.xpose.msra.mxu1 %v455_v3  ;;  %499 = vmatpush.bf16.msra.mxu2 %v1549_v24  ;;  %v406_v39 = vld [vmem:[#allocation10] sm:$0xf]  ;;  %v407_v53 = vld [vmem:[#allocation10 + $0x4] sm:$0xf]  ;;  %s770_s3 = scalar_lea.hbm %s1628_s6, %s968_s14  ;;  %s399_s19 = scalar_lea.vmem [#allocation11], %s1521_s26 }
  0x44   : > { %v588_v40 = vsel %vm567_vm3, %v406_v39, 0  ;;  %v569_v54 = vsel %vm567_vm3, %v407_v53, 0  ;;  %s772_s1 = sshll.u32 %s399_s19, 4  ;;  %s774_s17 = sshll.u32 %s770_s3, 4  ;;  %s773_s1 = int_to_ptr.vmem [resolvable:$true] %s772_s1  ;;  %s775_s17 = int_to_ptr.hbm [resolvable:$true] %s774_s17 }
  0x45   : > { %438 = vmatpush.bf16.msra.mxu0 %v975_v2  ;;  %s759_s24 = scalar_lea.sflag [#allocation4], %s1511_s5  ;;  %s1256_s12 = sshra.s32 %s775_s17, 4  ;;  %s1257_s12 = int_to_ptr.hbm [resolvable:$true] %s1256_s12 }
  0x46   : > { %s1258_s13 = scalar_lea.hbm %s1257_s12, 8  ;;  %s1262_s21 = scalar_lea.hbm %s1628_s6, 16 }
  0x47   : > { %p1259_p1 = scmp.ne.s32.totalorder %s1257_s12, %s1258_s13  ;;  %p1263_p8 = scmp.lt.s32.totalorder %s1257_s12, %s1628_s6 }
  0x48   : > { %946 = vmatmul.msk.bf16.vlgmr.msra.gmra.mxu0 %vm427_vm1, %v401_v4  ;;  %p1264_p10 = scmp.lt.s32.totalorder %s1262_s21, %s1258_s13 }
  0x49   : > { %578 = vmatpush.bf16.msrb.mxu0 %v569_v54  ;;  %p1260_p2 = pnand %p1259_p1, %p1456_p5 }
  0x4a   : > { %680 = vrot.lane.b32.xlu2 %v973_v1, %s1340_s29  ;;  %p1265_p11 = por %p1264_p10, %p1263_p8 }
  0x4b   : > { %597 = vmatpush.bf16.msrb.mxu1 %v588_v40  ;;  %p1261_p4 = pneg %p1260_p2 }
  0x4d   : > { %p1266_p12 = pnand %p1265_p11, %p1261_p4 }
  0x9c   : > { %v606_v25 = vpop.permute.xlu2 %605 }
  0x9d   : > { %v611_v26 = vsel %vm450_vm0, %v606_v25, 0 }
  0xa4   : > { %v681_v27 = vpop.permute.xlu2 %680 }
  0xa5   : > { %v686_v38 = vsel %vm450_vm0, %v681_v27, 0 }
  0xb4   : > { %v512_v5 = vpop.permute.xlu1 %511 }
  0xb5   : > { %v517_v6 = vsel %vm450_vm0, %v512_v5, 0 }
  0xb6   : > { %526 = vmatpush.bf16.xpose.msra.mxu3 %v517_v6 }
  0xbe   : > { %620 = vmatpush.bf16.xpose.msrb.mxu3 %v611_v26 }
  0xc5   : > { %v440_v7 = vpop.f32.mrf.mxu0 }
  0xc6   : > { %v444_v8 = vpack.c.bf16 %v440_v7, %v440_v7 }
  0xc8   : > { %v507_v9 = vunpack.c.l.b16 %v444_v8  ;;  %951 = vmatmul.msk.bf16.vlgmr.msra.gmra.mxu1 %vm450_vm0, %v444_v8 }
  0xc9   : > { %695 = vmatpush.bf16.xpose.msra.mxu1 %v686_v38 }
  0xca   : > { %v508_v10 = vpack.c.b16 %v507_v9, %v507_v9 }
  0xcc   : > { %509 = vrot.lane.b32.xlu1 %v508_v10, %s1338_s28 }
  0xcd   : > { %v442_v11 = vpop.f32.mrf.mxu0 }
  0xd4   : > { %678 = vrot.lane.b32.xlu1 %v508_v10, %s1340_s29 }
 0x13e   : > { %v510_v12 = vpop.permute.xlu1 %509 }
 0x13f   : > { %957 = vmatmul.msk.bf16.vlgmr.msra.gmra.mxu3 %vm450_vm0, %v510_v12 }
 0x145   : > { %v466_v13 = vpop.f32.mrf.mxu1 }
 0x146   : > { %v471_v14 = vsel %vm470_vm2, %v466_v13, -inf  ;;  %v679_v52 = vpop.permute.xlu1 %678 }
 0x147   : > { %472 = vmax.xlane.f32.xlu0 %v471_v14 }
 0x14d   : > { %v468_v15 = vpop.f32.mrf.mxu1 }
 0x1ba   : > { %v473_v16 = vpop.xlane.xlu0 %472 }
 0x1bb   : > { %v474_v17 = vsub.f32 %v466_v13, %v473_v16 }
 0x1bd   : > { %v475_v18 = vmul.f32 1.442695, %v474_v17 }
 0x1bf   : > { %1076 = vpow2.f32 %v475_v18 }
 0x1c2   : > { %v528_v19 = vpop.f32.mrf.mxu3 }
 0x1c3   : > { %v532_v20 = vsel %vm470_vm2, %v528_v19, -inf }
 0x1c4   : > { %533 = vmax.xlane.f32.xlu2 %v532_v20 }
 0x1c5   : > { %v1077_v21 = vpop.eup %1076 }
 0x1c6   : > { %v477_v22 = vsel %vm470_vm2, %v1077_v21, 0.0 }
 0x1c7   : > { %478 = vadd.xlane.f32.xlu0 %v477_v22 }
 0x1ca   : > { %v530_v23 = vpop.f32.mrf.mxu3 }
 0x1cb   : > { %v408_v23 = vld [vmem:[#allocation10 + $0x8] sm:$0xf] }
 0x1db   : > { %603 = vrot.lane.b32.xlu0 %v508_v10, %s1339_s27 }
 0x237   : > { %v534_v28 = vpop.xlane.xlu2 %533 }
 0x238   : > { %v535_v29 = vsub.f32 %v528_v19, %v534_v28 }
 0x23a   : > { %v536_v30 = vmul.f32 1.442695, %v535_v29  ;;  %v479_v31 = vpop.xlane.xlu0 %478 }
 0x23b   : > { %1078 = vrcp.f32 %v479_v31 }
 0x23c   : > { %1080 = vpow2.f32 %v536_v30 }
 0x241   : > { %v1079_v32 = vpop.eup %1078 }
 0x242   : > { %v1081_v33 = vpop.eup %1080  ;;  %v481_v34 = vmul.f32 %v1079_v32, %v1077_v21  ;;  %v409_v21 = vld [vmem:[#allocation10 + $0xc] sm:$0xf] }
 0x243   : > { %v538_v35 = vsel %vm470_vm2, %v1081_v33, 0.0  ;;  %v737_v22 = vsel %vm567_vm3, %v409_v21, 0 }
 0x244   : > { %539 = vadd.xlane.f32.xlu2 %v538_v35  ;;  %v482_v36 = vpack.c.bf16 %v481_v34, %v481_v34 }
 0x246   : > { %956 = vmatmul.msk.bf16.vlgmr.msra.gmra.mxu2 %vm470_vm2, %v482_v36  ;;  %v1075_v36 = vld [vmem:[%s1661_s9] ss:$0 sm:$0xff] }
 0x24d   : > { %v604_v37 = vpop.permute.xlu0 %603 }
 0x24e   : > { %961 = vmatmul.msk.bf16.vlgmr.msrb.gmra.mxu3 %vm450_vm0, %v604_v37 }
 0x25c   : > { %544 = vrot.lane.b32.xlu2 %v1549_v24, %s1338_s28 }
 0x2b7   : > { %v540_v41 = vpop.xlane.xlu2 %539 }
 0x2b8   : > { %1082 = vrcp.f32 %v540_v41 }
 0x2be   : > { %v1083_v42 = vpop.eup %1082 }
 0x2bf   : > { %v542_v43 = vmul.f32 %v1083_v42, %v1081_v33  ;;  %v545_v44 = vpop.permute.xlu2 %544 }
 0x2c0   : > { %557 = vmatpush.bf16.msrb.mxu2 %v545_v44 }
 0x2c1   : > { %v543_v45 = vpack.c.bf16 %v542_v43, %v542_v43 }
 0x2c3   : > { %958 = vmatmul.msk.bf16.vlgmr.msrb.gmra.mxu2 %vm470_vm2, %v543_v45 }
 0x2c9   : > { %v501_v46 = vpop.f32.mrf.mxu2 }
 0x2ca   : > { %v505_v47 = vpack.c.bf16 %v501_v46, %v501_v46 }
 0x2cc   : > { %960 = vmatmul.msk.bf16.vlgmr.msrb.gmra.mxu1 %vm450_vm0, %v505_v47 }
 0x2d1   : > { %v503_v48 = vpop.f32.mrf.mxu2  ;;  %v622_v49 = vpop.f32.mrf.mxu3 }
 0x2d2   : > { %v626_v50 = vsel %vm470_vm2, %v622_v49, -inf }
 0x2d3   : > { %627 = vmax.xlane.f32.xlu0 %v626_v50 }
 0x2d9   : > { %v624_v51 = vpop.f32.mrf.mxu3 }
 0x2dc   : > { %964 = vmatmul.msk.bf16.vlgmr.msra.gmra.mxu1 %vm450_vm0, %v679_v52 }
 0x2e7   : > { %713 = vrot.lane.b32.xlu0 %v1549_v24, %s1340_s29 }
 0x346   : > { %v559_v55 = vpop.f32.mrf.mxu2  ;;  %v628_v58 = vpop.xlane.xlu0 %627 }
 0x347   : > { %v563_v56 = vpack.c.bf16 %v559_v55, %v559_v55  ;;  %v629_v60 = vsub.f32 %v622_v49, %v628_v58 }
 0x349   : > { %959 = vmatmul.msk.bf16.vlgmr.msrb.gmra.mxu0 %vm450_vm0, %v563_v56  ;;  %v599_v57 = vpop.f32.mrf.mxu1  ;;  %v630_v62 = vmul.f32 1.442695, %v629_v60 }
 0x34b   : > { %1084 = vpow2.f32 %v630_v62 }
 0x34e   : > { %v561_v59 = vpop.f32.mrf.mxu2 }
 0x351   : > { %v601_v61 = vpop.f32.mrf.mxu1  ;;  %v1085_v1 = vpop.eup %1084 }
 0x352   : > { %v632_v3 = vsel %vm470_vm2, %v1085_v1, 0.0 }
 0x359   : > { %v697_v63 = vpop.f32.mrf.mxu1  ;;  %v714_v11 = vpop.permute.xlu0 %713 }
 0x35a   : > { %v701_v0 = vsel %vm470_vm2, %v697_v63, -inf  ;;  %726 = vmatpush.bf16.msra.mxu3 %v714_v11 }
 0x35b   : > { %702 = vmax.xlane.f32.xlu1 %v701_v0 }
 0x361   : > { %v699_v2 = vpop.f32.mrf.mxu1 }
 0x363   : > { %633 = vadd.xlane.f32.xlu1 %v632_v3 }
 0x3c6   : > { %v580_v4 = vpop.f32.mrf.mxu0 }
 0x3c7   : > { %v600_v33 = vadd.f32 %v599_v57, %v580_v4 }
 0x3ce   : > { %v703_v5 = vpop.xlane.xlu1 %702  ;;  %v582_v6 = vpop.f32.mrf.mxu0 }
 0x3cf   : > { %v704_v7 = vsub.f32 %v697_v63, %v703_v5 }
 0x3d1   : > { %v705_v8 = vmul.f32 1.442695, %v704_v7 }
 0x3d3   : > { %1086 = vpow2.f32 %v705_v8 }
 0x3d6   : > { %v634_v12 = vpop.xlane.xlu1 %633 }
 0x3d9   : > { %v1087_v9 = vpop.eup %1086 }
 0x3da   : > { %v707_v10 = vsel %vm470_vm2, %v1087_v9, 0.0 }
 0x3db   : > { %708 = vadd.xlane.f32.xlu1 %v707_v10 }
 0x3f4   : > { %638 = vrot.lane.b32.xlu1 %v1549_v24, %s1339_s27  ;;  %v662_v24 = vsel %vm567_vm3, %v408_v23, 0 }
 0x3f5   : > { %671 = vmatpush.bf16.msra.mxu0 %v662_v24 }
 0x44e   : > { %v709_v13 = vpop.xlane.xlu1 %708 }
 0x44f   : > { %1088 = vrcp.f32 %v709_v13 }
 0x450   : > { %1090 = vrcp.f32 %v634_v12 }
 0x455   : > { %v1089_v14 = vpop.eup %1088 }
 0x456   : > { %v711_v15 = vmul.f32 %v1089_v14, %v1087_v9  ;;  %v1091_v17 = vpop.eup %1090 }
 0x457   : > { %v636_v18 = vmul.f32 %v1091_v17, %v1085_v1 }
 0x458   : > { %v712_v16 = vpack.c.bf16 %v711_v15, %v711_v15 }
 0x459   : > { %v637_v20 = vpack.c.bf16 %v636_v18, %v636_v18 }
 0x45a   : > { %965 = vmatmul.msk.bf16.vlgmr.msra.gmra.mxu3 %vm470_vm2, %v712_v16 }
 0x466   : > { %v639_v19 = vpop.permute.xlu1 %638 }
 0x467   : > { %651 = vmatpush.bf16.msra.mxu2 %v639_v19 }
 0x46a   : > { %962 = vmatmul.msk.bf16.vlgmr.msra.gmra.mxu2 %vm470_vm2, %v637_v20 }
 0x46b   : > { %746 = vmatpush.bf16.msrb.mxu2 %v737_v22 }
 0x4dd   : > { %v728_v25 = vpop.f32.mrf.mxu3 }
 0x4de   : > { %v732_v26 = vpack.c.bf16 %v728_v25, %v728_v25 }
 0x4e0   : > { %966 = vmatmul.msk.bf16.vlgmr.msrb.gmra.mxu2 %vm450_vm0, %v732_v26 }
 0x4e5   : > { %v730_v27 = vpop.f32.mrf.mxu3 }
 0x4ed   : > { %v653_v28 = vpop.f32.mrf.mxu2 }
 0x4ee   : > { %v657_v29 = vpack.c.bf16 %v653_v28, %v653_v28 }
 0x4f0   : > { %963 = vmatmul.msk.bf16.vlgmr.msra.gmra.mxu0 %vm450_vm0, %v657_v29 }
 0x4f5   : > { %v655_v30 = vpop.f32.mrf.mxu2 }
 0x563   : > { %v748_v31 = vpop.f32.mrf.mxu2 }
 0x56b   : > { %v750_v32 = vpop.f32.mrf.mxu2 }
 0x56d   : > { %v673_v34 = vpop.f32.mrf.mxu0 }
 0x56e   : > { %v677_v35 = vadd.f32 %v673_v34, %v600_v33 }
 0x570   : > { %v752_v37 = vadd.f32 %v748_v31, %v677_v35 }
 0x572   : > { %v756_v38 = vadd.f32 %v1075_v36, %v752_v37 }
 0x574   : > { %757 = vst.msk [vmem:[%s399_s19] sm:$0xff] %vm427_vm1, %v756_v38 }
 0x575   : > { %v675_v39 = vpop.f32.mrf.mxu0 }
 0x576   : > { %1269 = shalt.err (!%p1266_p12)
}
 0x577   : > { %991 = dma.vmem_to_hbm [thread:$0]  (%p1456_p5), %s773_s1, 128, %s775_s17, %s759_s24  }
 0x578 PF: > { %s1663_s5 = sld [smem:[#allocation16_spill]] }
 0x579   : > { %s1665_s20 = sld [smem:[#allocation18_spill]] }
 0x57e   : > { %s786_s28 = sand.u32 1, %s1663_s5  }
 0x57f   : > { %p1666_p13 = scmp.ge.s32.totalorder %s1665_s20, 2  ;;  %s787_s27 = scalar_lea.sflag [#allocation4], %s786_s28 }
 0x581   : > { %p1011_p0 = pnand %p1666_p13, %p1421_p6 }
 0x583   : > { %p1012_p3 = pneg %p1011_p0 }
 0x585   : > { %1307 = dma.done.wait (%p1012_p3), %s787_s27, 128  }
 0x586   : > { %1309 = vsyncadd (%p1012_p3), %s787_s27, 4294967168  ;;  %s26_s26 = sadd.s32 1, %s1665_s20   ;;  %s1667_s29 = sld [smem:[#allocation17_spill]] }
 0x587   : > { %p23_p7 = scmp.ge.s32.totalorder %s26_s26, 4   ;;  %s1668_s23 = sld [smem:[#allocation22_spill]] }
 0x588   : > { %s1669_s14 = sld [smem:[#allocation20_spill]]  ;;  %s1670_s21 = smov %s1316_s22 }
 0x589   : > { %s1672_s24 = smov %s1328_s25 }
 0x58a   :  { %25 = sbr.rel (!%p23_p7) target bundleno = 13 (0xd), region = 121 }
 0x58c   : > { %s1671_s22 = smov %s1667_s29 }
 0x58e   : > { %s1673_s25 = smov %s1669_s14 }
 0x58f   :  { %793 = vsyncpa [#allocation3], 1 }
 0x590   :  { %795 = vsyncpa [#allocation3 + $0x1], 1 }
 0x591   :  { %796 = vsyncpa [#allocation6], 1 }
 0x592   :  { %798 = vsyncpa [#allocation6 + $0x1], 1 }
 0x593   :  { %799 = vsyncpa [#allocation9], 1 }
 0x594   :  { %800 = vsyncpa [#allocation4], 1 }
 0x595   :  { %802 = vsyncpa [#allocation4 + $0x1], 1 }

</bundles_post_ra>
